<compile_context>
chip_gen: v5e
topology: v5e:2x2
jax: 0.10.0
libtpu: 0.0.40
codegen_flags: <defaults>
</compile_context>

<pallas_src>
import functools
import math

import jax
import jax.numpy as jnp
from jax.experimental import pallas as pl
from jax.experimental.pallas import tpu as pltpu

# ---- hyper-parameters (small, consistent with the module) -------------------
N_TX = 2
N_RX = 2
N_CARRIER = 8
DIM_FEEDBACK = 16
BATCH = 2
TAU = 5.0                                   # GumbelSoftmaxBitRelaxation(temperature=5)

D_IN = N_CARRIER * N_TX * N_RX * 2          # 64  (Linear in_features)
D_OUT = 2 * DIM_FEEDBACK                    # 32  (Linear out_features)

SUBLANE = 8
MAX_TILE_B = 256                            # batch rows per grid step when batched


# ---- fused forward kernel ----------------------------------------------------
def _transmitter_kernel(x_ref, wd_ref, bd_ref, noise_ref, o_ref, *, hard, inv_tau):
    # d = z0 - z1 directly (temp-difference already folded into W_d / b_d).
    d = jnp.dot(x_ref[...], wd_ref[...],
                preferred_element_type=jnp.float32) + bd_ref[...]   # (tile_b, 16)
    z = d + noise_ref[...]            # + Logistic(0,1)  ==  + (Gumbel0 - Gumbel1)
    if hard:
        # eval mode: hard one-hot over the size-2 temp axis, component 0
        o_ref[...] = jnp.where(z >= 0.0, 1.0, 0.0)
    else:
        # training mode: soft softmax over 2 elems, comp. 0 == sigmoid((z0-z1)/tau)
        o_ref[...] = 1.0 / (1.0 + jnp.exp(-z * inv_tau))


@functools.partial(jax.jit, static_argnames=("hard",))
def transmitter_forward(input_tensor, w_diff, b_diff, noise, hard=True):
    """input_tensor: (B, n_rx, n_tx, n_carrier, 2), noise: (B, dim_feedback)
       -> (B, dim_feedback) bits (hard) or soft probabilities."""
    B = input_tensor.shape[0]
    # Free contiguous flatten in natural (b, nrx, ntx, c, complex) order; the
    # einops permutation is folded into w_diff's rows at construction time.
    x_flat = input_tensor.reshape(B, D_IN).astype(jnp.float32)
    noise = noise.astype(jnp.float32)

    # Sublane-aligned batch tiling so the same kernel scales to large effective
    # batches (the real perf lever); at B=2 this is a single grid step.
    padded_b = -(-B // SUBLANE) * SUBLANE
    tile_b = min(MAX_TILE_B, padded_b)
    padded_b = -(-padded_b // tile_b) * tile_b
    if padded_b != B:
        x_flat = jnp.pad(x_flat, ((0, padded_b - B), (0, 0)))
        noise = jnp.pad(noise, ((0, padded_b - B), (0, 0)))

    kernel = functools.partial(_transmitter_kernel, hard=hard, inv_tau=1.0 / TAU)
    out = pl.pallas_call(
        kernel,
        out_shape=jax.ShapeDtypeStruct((padded_b, DIM_FEEDBACK), jnp.float32),
        grid=(padded_b // tile_b,),
        in_specs=[
            pl.BlockSpec((tile_b, D_IN), lambda i: (i, 0)),           # x tile
            pl.BlockSpec((D_IN, DIM_FEEDBACK), lambda i: (0, 0)),     # folded W_d (resident)
            pl.BlockSpec((1, DIM_FEEDBACK), lambda i: (0, 0)),        # folded b_d (resident)
            pl.BlockSpec((tile_b, DIM_FEEDBACK), lambda i: (i, 0)),   # logistic noise tile
        ],
        out_specs=pl.BlockSpec((tile_b, DIM_FEEDBACK), lambda i: (i, 0)),
        compiler_params=pltpu.CompilerParams(
            dimension_semantics=("parallel",)),   # both TCs on v7x once batched
    )(x_flat, w_diff, b_diff, noise)
    # TODO(synk): for very large B, pack 8 feedback vectors along lanes
    # ((B/8, 128) output) for unmasked lane-dense stores; at demo sizes the
    # 16-lane masked store is below the launch-overhead noise floor.
    return out[:B]


# ---- parameter construction & one-time layout folding ------------------------
def init_torch_style_params(key):
    """PyTorch Linear layout: weight (out, in), bias (out,), U(-1/sqrt(in), 1/sqrt(in))."""
    wk, bk = jax.random.split(key)
    bound = 1.0 / math.sqrt(D_IN)
    w_torch = jax.random.uniform(wk, (D_OUT, D_IN), jnp.float32, -bound, bound)
    b_torch = jax.random.uniform(bk, (D_OUT,), jnp.float32, -bound, bound)
    return w_torch, b_torch


def fold_params(w_torch, b_torch):
    """One-time weight transform (zero runtime cost):
       * rows: torch in-feature order (c, nrx, ntx, complex) -> natural flatten
               order (nrx, ntx, c, complex)      [input rearrange folded]
       * cols: keep only the temp0 - temp1 DIFFERENCE (both hard and soft
               outputs depend only on z0 - z1)   [output rearrange + temp axis folded]."""
    w6 = w_torch.reshape(DIM_FEEDBACK, 2, N_CARRIER, N_RX, N_TX, 2)  # (f, temp, c, r, t, x)
    w_d = w6[:, 0] - w6[:, 1]                                        # (f, c, r, t, x)
    w_d = jnp.transpose(w_d, (2, 3, 1, 4, 0))                        # (r, t, c, x, f)
    w_d = w_d.reshape(D_IN, DIM_FEEDBACK)                            # natural-in x feedback
    b2 = b_torch.reshape(DIM_FEEDBACK, 2)
    b_d = (b2[:, 0] - b2[:, 1]).reshape(1, DIM_FEEDBACK)
    return jnp.asarray(w_d), jnp.asarray(b_d)


# ---- pure-JAX reference (torch-layout params, same noise) --------------------
def reference_forward(x, w_torch, b_torch, noise, hard=True):
    B = x.shape[0]
    # einops 'b nrx ntx c complex -> b (c nrx ntx complex)'
    x_re = jnp.transpose(x, (0, 3, 1, 2, 4)).reshape(B, D_IN)
    y = x_re @ w_torch.T + b_torch                                   # (B, 32)
    d = y[:, 0::2] - y[:, 1::2]                                      # z0 - z1, (B, 16)
    z = d + noise
    if hard:
        return jnp.where(z >= 0.0, 1.0, 0.0), z
    return 1.0 / (1.0 + jnp.exp(-z / TAU)), z


# ---- demo --------------------------------------------------------------------
if __name__ == "__main__":
    key = jax.random.PRNGKey(0)
    pkey, xkey, nkey = jax.random.split(key, 3)

    w_torch, b_torch = init_torch_style_params(pkey)
    w_diff, b_diff = fold_params(w_torch, b_torch)

    x = jax.random.normal(xkey, (BATCH, N_RX, N_TX, N_CARRIER, 2), jnp.float32)
    # One Logistic(0,1) draw per output bit (== difference of two Gumbel(0,1)).
    noise = jax.random.logistic(nkey, (BATCH, DIM_FEEDBACK), jnp.float32)

    out = transmitter_forward(x, w_diff, b_diff, noise, hard=True)   # eval mode
    out = jax.block_until_ready(out)

    assert out.shape == (BATCH, DIM_FEEDBACK), out.shape
    assert bool(jnp.all(jnp.isfinite(out)))
    # eval mode (hard gumbel-softmax) produces {0, 1} bits
    assert bool(jnp.all((out == 0.0) | (out == 1.0)))

    # Check against the pure-JAX reference using the SAME noise; any mismatch
    # must be a floating-point near-tie of the perturbed logit.
    ref_bits, ref_z = reference_forward(x, w_torch, b_torch, noise, hard=True)
    agree_or_tie = (out == ref_bits) | (jnp.abs(ref_z) < 1e-4)
    assert bool(jnp.all(agree_or_tie))

    print("KERNEL_OK")
</pallas_src>

<mosaic_0001>
module attributes {stable_mosaic.version = 11 : i64} {
  func.func @_transmitter_kernel(%arg0: i32, %arg1: memref<8x64xf32, #tpu.memory_space<vmem>>, %arg2: memref<64x16xf32, #tpu.memory_space<vmem>>, %arg3: memref<1x16xf32, #tpu.memory_space<vmem>>, %arg4: memref<8x16xf32, #tpu.memory_space<vmem>>, %arg5: memref<8x16xf32, #tpu.memory_space<vmem>>) attributes {dimension_semantics = [#tpu.dimension_semantics<parallel>], iteration_bounds = array<i64: 1>, scalar_prefetch = 0 : i64, scratch_operands = 0 : i64, tpu.core_type = #tpu.core_type<tc>, window_params = [{transform_indices = @transform_0, window_bounds = array<i64: 8, 64>}, {pipeline_mode = #tpu.pipeline_mode<synchronous>, transform_indices = @transform_1, window_bounds = array<i64: 64, 16>}, {pipeline_mode = #tpu.pipeline_mode<synchronous>, transform_indices = @transform_2, window_bounds = array<i64: 1, 16>}, {transform_indices = @transform_3, window_bounds = array<i64: 8, 16>}, {transform_indices = @transform_4, window_bounds = array<i64: 8, 16>}]} {
    %c0 = arith.constant 0 : index
    %c0_0 = arith.constant 0 : index
    %0 = vector.load %arg1[%c0, %c0_0] : memref<8x64xf32, #tpu.memory_space<vmem>>, vector<8x64xf32>
    %c0_1 = arith.constant 0 : index
    %c0_2 = arith.constant 0 : index
    %1 = vector.load %arg2[%c0_1, %c0_2] : memref<64x16xf32, #tpu.memory_space<vmem>>, vector<64x16xf32>
    %cst = arith.constant dense<0.000000e+00> : vector<8x16xf32>
    %2 = tpu.matmul %0, %1, %cst {dimension_numbers = #tpu.dot_dimension_numbers<[1], [0], [0], [1], [0, 0, 1, 1], [], []>} : vector<8x64xf32>, vector<64x16xf32>, vector<8x16xf32> -> vector<8x16xf32>
    %c0_3 = arith.constant 0 : index
    %c0_4 = arith.constant 0 : index
    %3 = vector.load %arg3[%c0_3, %c0_4] : memref<1x16xf32, #tpu.memory_space<vmem>>, vector<1x16xf32>
    %4 = vector.broadcast %3 : vector<1x16xf32> to vector<8x16xf32>
    %5 = arith.addf %2, %4 : vector<8x16xf32>
    %c0_5 = arith.constant 0 : index
    %c0_6 = arith.constant 0 : index
    %6 = vector.load %arg4[%c0_5, %c0_6] : memref<8x16xf32, #tpu.memory_space<vmem>>, vector<8x16xf32>
    %7 = arith.addf %5, %6 : vector<8x16xf32>
    %cst_7 = arith.constant 0.000000e+00 : f32
    %8 = vector.broadcast %cst_7 : f32 to vector<8x16xf32>
    %9 = arith.cmpf oge, %7, %8 : vector<8x16xf32>
    %cst_8 = arith.constant 1.000000e+00 : f32
    %cst_9 = arith.constant 0.000000e+00 : f32
    %10 = vector.broadcast %cst_8 : f32 to vector<8x16xf32>
    %11 = vector.broadcast %cst_9 : f32 to vector<8x16xf32>
    %12 = arith.select %9, %10, %11 : vector<8x16xi1>, vector<8x16xf32>
    %c0_10 = arith.constant 0 : index
    %c0_11 = arith.constant 0 : index
    %13 = vector.load %arg5[%c0_10, %c0_11] : memref<8x16xf32, #tpu.memory_space<vmem>>, vector<8x16xf32>
    tpu.vector_store %arg5[%c0_10, %c0_11], %12 {strides = array<i32>} : memref<8x16xf32, #tpu.memory_space<vmem>>, vector<8x16xf32>,
    return
  }
  func.func @transform_0(%arg0: i32) -> (i32, i32) {
    %c0_i32 = arith.constant 0 : i32
    %c0_i32_0 = arith.constant 0 : i32
    return %arg0, %c0_i32 : i32, i32
  }
  func.func @transform_1(%arg0: i32) -> (i32, i32) {
    %c0_i32 = arith.constant 0 : i32
    %c0_i32_0 = arith.constant 0 : i32
    %c0_i32_1 = arith.constant 0 : i32
    return %c0_i32, %c0_i32_0 : i32, i32
  }
  func.func @transform_2(%arg0: i32) -> (i32, i32) {
    %c0_i32 = arith.constant 0 : i32
    %c0_i32_0 = arith.constant 0 : i32
    %c0_i32_1 = arith.constant 0 : i32
    return %c0_i32, %c0_i32_0 : i32, i32
  }
  func.func @transform_3(%arg0: i32) -> (i32, i32) {
    %c0_i32 = arith.constant 0 : i32
    %c0_i32_0 = arith.constant 0 : i32
    return %arg0, %c0_i32 : i32, i32
  }
  func.func @transform_4(%arg0: i32) -> (i32, i32) {
    %c0_i32 = arith.constant 0 : i32
    %c0_i32_0 = arith.constant 0 : i32
    return %arg0, %c0_i32 : i32, i32
  }
}

</mosaic_0001>

<bundles_post_ra>
// kernel: transmitter_forward.1
= control target key start
LH: loop header
LB: loop body
LE: loop exit
PB: predicated region body
PF: predicated region fallthrough
CT: control target
= control target key end

     0   :  { %vm30_vm0 = vcmask 523264   ;;  %vm58_vm1 = vcmask 130048   ;;  %v67_v14 = vmov 0.0   ;;  %s129_s1 = inlined_call_operand.vmem [shape: f32[64,16], index: 1, kind: input, shape index: {}]   ;;  %s130_s2 = inlined_call_operand.vmem [shape: f32[1,16], index: 2, kind: input, shape index: {}]   ;;  %s131_s0 = inlined_call_operand.vmem [shape: f32[8,64], index: 0, kind: input, shape index: {}]   ;;  %s132_s3 = inlined_call_operand.vmem [shape: f32[8,16], index: 3, kind: input, shape index: {}]   ;;  %s133_s4 = inlined_call_operand.vmem [shape: f32[8,16], index: 4, kind: output, shape index: {}]  }
   0x1   :  { %v25_v0 = vld [vmem:[%s129_s1 + $0x38] sm:$0xff]  ;;  %v24_v1 = vld [vmem:[%s129_s1 + $0x30] sm:$0xff]  ;;  %v23_v2 = vld [vmem:[%s129_s1 + $0x28] sm:$0xff] }
   0x2   :  { %42 = vmatpush.msra.mxu0 %v25_v0  ;;  %v22_v3 = vld [vmem:[%s129_s1 + $0x20] sm:$0xff]  ;;  %v21_v4 = vld [vmem:[%s129_s1 + $0x18] sm:$0xff]  ;;  %v20_v5 = vld [vmem:[%s129_s1 + $0x10] sm:$0xff] }
   0x3   :  { %v19_v6 = vld [vmem:[%s129_s1 + $0x8] sm:$0xff]  ;;  %v18_v7 = vld [vmem:[%s129_s1] sm:$0xff] }
   0x4   :  { %43 = vmatpush.msra.mxu0 %v24_v1  ;;  %v17_v8 = vld [vmem:[%s131_s0] sm:$0xff] }
   0x5   :  { %v66_v9 = vld [vmem:[%s130_s2] ss:$0 sm:$0xff] }
   0x6   :  { %44 = vmatpush.msra.mxu0 %v23_v2  ;;  %v54_v11 = vld [vmem:[%s132_s3] sm:$0xff] }
   0x8   :  { %45 = vmatpush.msra.mxu0 %v22_v3 }
   0xa   :  { %46 = vmatpush.msra.mxu0 %v21_v4 }
   0xc   :  { %47 = vmatpush.msra.mxu0 %v20_v5 }
   0xe   :  { %48 = vmatpush.msra.mxu0 %v19_v6 }
  0x10   :  { %49 = vmatpush.msra.mxu0 %v18_v7 }
  0x11   :  { %64 = vmatmul.msk.f32.vlgmr.msra.gmra.mxu0 %vm30_vm0, %v17_v8 }
  0x8e   :  { %v51_v10 = vpop.f32.mrf.mxu0 }
  0x8f   :  { %v52_v12 = vadd.f32 %v66_v9, %v51_v10 }
  0x91   :  { %v55_v13 = vadd.f32 %v54_v11, %v52_v12 }
  0x93   :  { %vm56_vm2 = vcmp.ge.f32.partialorder %v55_v13, 0.0 }
  0x94   :  { %v57_v15 = vsel %vm56_vm2, 1.0, %v67_v14 }
  0x95   :  { %59 = vst.msk [vmem:[%s133_s4] sm:$0xff] %vm58_vm1, %v57_v15 }

</bundles_post_ra>
